<compile_context>
chip_gen: v6e
topology: v6e:2x2x1
jax: 0.10.0
libtpu: 0.0.40
codegen_flags: <defaults>
</compile_context>

<pallas_src>
import functools

import jax
import jax.numpy as jnp
from jax.experimental import pallas as pl
from jax.experimental.pallas import tpu as pltpu

LN_EPS = 1e-5

# Keep the resident (S*D, S*D) block-diagonal reducer matrix <= 4 MiB f32.
_MAX_SEG_MATRIX_DIM = 1024


# ---------------------------------------------------------------------------
# Kernels
# ---------------------------------------------------------------------------
def _embed_ln_lanedense_kernel(x_ref, pos_ref, gamma_ref, beta_ref, seg_ref,
                               o_ref, *, inv_d):
    # x_ref: (TR, S*D) lane-dense rows; pos/gamma/beta: (1, S*D); seg: (S*D, S*D)
    e = x_ref[...].astype(jnp.float32) + pos_ref[...].astype(jnp.float32)
    seg = seg_ref[...]
    # Per-D-segment sums via block-diagonal-ones matmul on the MXU.
    mean = jnp.dot(e, seg, preferred_element_type=jnp.float32) * inv_d
    diff = e - mean
    var = jnp.dot(diff * diff, seg, preferred_element_type=jnp.float32) * inv_d
    inv = jax.lax.rsqrt(var + LN_EPS)
    out = (diff * inv * gamma_ref[...].astype(jnp.float32)
           + beta_ref[...].astype(jnp.float32))
    o_ref[...] = out.astype(o_ref.dtype)


def _embed_ln_rows_kernel(x_ref, pos_ref, gamma_ref, beta_ref, o_ref):
    # Fallback: x_ref (TR, S, D); LayerNorm reduction over the last (lane) axis.
    e = x_ref[...].astype(jnp.float32) + pos_ref[...].astype(jnp.float32)[None]
    mean = jnp.mean(e, axis=-1, keepdims=True)
    diff = e - mean
    var = jnp.mean(diff * diff, axis=-1, keepdims=True)
    inv = jax.lax.rsqrt(var + LN_EPS)
    g = gamma_ref[...].astype(jnp.float32)[None]   # (1, 1, D)
    b = beta_ref[...].astype(jnp.float32)[None]
    o_ref[...] = (diff * inv * g + b).astype(o_ref.dtype)


# ---------------------------------------------------------------------------
# Wrappers
# ---------------------------------------------------------------------------
def _pick_tr(n_rows, row_bytes, *, vmem_budget=8 << 20, tr_cap=1024,
             min_tr=128, target_steps=4):
    """Rows per grid step.

    Big enough to amortize the ~0.35 us/step pipeline overhead, small enough
    that double-buffered (in + out) blocks fit a conservative VMEM budget
    (safe under v5e's 16 MiB scoped default), and split into >= target_steps
    steps when there is enough work (pipelining / v7x megacore).
    """
    budget_tr = max(8, vmem_budget // (4 * row_bytes))   # 2 bufs x (in + out)
    tr = min(tr_cap, budget_tr)
    if n_rows > min_tr * target_steps:
        tr = min(tr, pl.cdiv(n_rows, target_steps))
    tr = min(tr, n_rows)
    if tr < n_rows:
        tr = max(8, (tr // 8) * 8)   # second-to-minor block dim: multiple of 8
    return tr


def _run_embed_ln_lanedense(x_rsd, pos_table, gamma, beta):
    """x_rsd: (R, S, D), S*D % 128 == 0. Lane-dense (R, S*D) blocks + MXU reduce."""
    R, S, D = x_rsd.shape
    SD = S * D
    x2 = x_rsd.reshape(R, SD)                                   # trailing-dim merge (free)
    pos2 = pos_table.astype(jnp.float32).reshape(1, SD)
    gamma2 = jnp.tile(gamma.astype(jnp.float32), S).reshape(1, SD)
    beta2 = jnp.tile(beta.astype(jnp.float32), S).reshape(1, SD)
    seg_ids = jnp.arange(SD, dtype=jnp.int32) // D
    seg = (seg_ids[:, None] == seg_ids[None, :]).astype(jnp.float32)  # (SD, SD)

    tr = _pick_tr(R, SD * x2.dtype.itemsize)
    grid = (pl.cdiv(R, tr),)
    kernel = functools.partial(_embed_ln_lanedense_kernel, inv_d=1.0 / D)

    out2 = pl.pallas_call(
        kernel,
        out_shape=jax.ShapeDtypeStruct((R, SD), x_rsd.dtype),
        grid_spec=pltpu.PrefetchScalarGridSpec(
            num_scalar_prefetch=0,
            grid=grid,
            in_specs=[
                pl.BlockSpec((tr, SD), lambda r: (r, 0)),
                pl.BlockSpec((1, SD), lambda r: (0, 0)),    # pos (resident)
                pl.BlockSpec((1, SD), lambda r: (0, 0)),    # gamma (resident)
                pl.BlockSpec((1, SD), lambda r: (0, 0)),    # beta (resident)
                pl.BlockSpec((SD, SD), lambda r: (0, 0)),   # seg reducer (resident)
            ],
            out_specs=pl.BlockSpec((tr, SD), lambda r: (r, 0)),
        ),
        compiler_params=pltpu.CompilerParams(
            dimension_semantics=("parallel",)),
    )(x2, pos2, gamma2, beta2, seg)
    return out2.reshape(R, S, D)


def _run_embed_ln_rows(x_rsd, pos_table, gamma, beta):
    """Generic fallback: (TR, S, D) blocks, LN reduction over the last axis."""
    R, S, D = x_rsd.shape
    gamma2 = gamma.astype(jnp.float32).reshape(1, D)
    beta2 = beta.astype(jnp.float32).reshape(1, D)

    tr = _pick_tr(R, S * D * x_rsd.dtype.itemsize)
    grid = (pl.cdiv(R, tr),)

    return pl.pallas_call(
        _embed_ln_rows_kernel,
        out_shape=jax.ShapeDtypeStruct((R, S, D), x_rsd.dtype),
        grid_spec=pltpu.PrefetchScalarGridSpec(
            num_scalar_prefetch=0,
            grid=grid,
            in_specs=[
                pl.BlockSpec((tr, S, D), lambda r: (r, 0, 0)),
                pl.BlockSpec((S, D), lambda r: (0, 0)),
                pl.BlockSpec((1, D), lambda r: (0, 0)),
                pl.BlockSpec((1, D), lambda r: (0, 0)),
            ],
            out_specs=pl.BlockSpec((tr, S, D), lambda r: (r, 0, 0)),
        ),
        compiler_params=pltpu.CompilerParams(
            dimension_semantics=("parallel",)),
    )(x_rsd, pos_table.astype(jnp.float32), gamma2, beta2)


def _run_embed_ln(x_rsd, pos_table, gamma, beta):
    R, S, D = x_rsd.shape
    SD = S * D
    if SD % 128 == 0 and SD <= _MAX_SEG_MATRIX_DIM:
        return _run_embed_ln_lanedense(x_rsd, pos_table, gamma, beta)
    return _run_embed_ln_rows(x_rsd, pos_table, gamma, beta)


def embedding_forward(x, pos_table, gamma, beta, *, etype, num_of_features):
    """Pallas implementation of Embedding.forward.

    etype == 'T': x is (B, d_Em, F, S)  -> out (B, F, S, d_Em)
    else:         x is (B, S, d_Em)     -> out (B, S, d_Em)
    """
    if etype == "T":
        B, D, F, S = x.shape
        assert F == num_of_features
        # TODO(synk): this permute is one extra HBM pass; not fused into the kernel.
        x_rsd = jnp.transpose(x, (0, 2, 3, 1)).reshape(B * F, S, D)
        out = _run_embed_ln(x_rsd, pos_table, gamma, beta)
        return out.reshape(B, F, S, D)
    else:
        return _run_embed_ln(x, pos_table, gamma, beta)


def _reference(x, pos_table, gamma, beta, *, etype):
    if etype == "T":
        e = jnp.transpose(x, (0, 2, 3, 1)) + pos_table[None, None, :, :]
    else:
        e = x + pos_table[None, :, :]
    mean = jnp.mean(e, axis=-1, keepdims=True)
    var = jnp.mean((e - mean) ** 2, axis=-1, keepdims=True)
    return (e - mean) * jax.lax.rsqrt(var + LN_EPS) * gamma + beta


if __name__ == "__main__":
    # Small, module-consistent shapes.
    batch = 2
    nb_seq = 8            # S
    d_Em = 32             # embedding / LayerNorm dim
    num_of_features = 4   # F

    key = jax.random.PRNGKey(0)
    k_x, k_pos, k_xs = jax.random.split(key, 3)

    # nn.Embedding weight ~ N(0, 1); LayerNorm weight = 1, bias = 0.
    pos_table = jax.random.normal(k_pos, (nb_seq, d_Em), dtype=jnp.float32)
    gamma = jnp.ones((d_Em,), dtype=jnp.float32)
    beta = jnp.zeros((d_Em,), dtype=jnp.float32)

    fwd_t = jax.jit(functools.partial(embedding_forward, etype="T",
                                      num_of_features=num_of_features))
    fwd_s = jax.jit(functools.partial(embedding_forward, etype="S",
                                      num_of_features=num_of_features))

    # --- Etype == 'T' path ---
    x_t = jax.random.normal(k_x, (batch, d_Em, num_of_features, nb_seq),
                            dtype=jnp.float32)
    out_t = jax.block_until_ready(fwd_t(x_t, pos_table, gamma, beta))
    ref_t = _reference(x_t, pos_table, gamma, beta, etype="T")
    assert out_t.shape == (batch, num_of_features, nb_seq, d_Em)
    assert jnp.allclose(out_t, ref_t, atol=1e-5, rtol=1e-5)

    # --- Etype != 'T' (spatial) path ---
    x_s = jax.random.normal(k_xs, (batch, nb_seq, d_Em), dtype=jnp.float32)
    out_s = jax.block_until_ready(fwd_s(x_s, pos_table, gamma, beta))
    ref_s = _reference(x_s, pos_table, gamma, beta, etype="S")
    assert out_s.shape == (batch, nb_seq, d_Em)
    assert jnp.allclose(out_s, ref_s, atol=1e-5, rtol=1e-5)

    print("KERNEL_OK")
</pallas_src>

<mosaic_0001>
module attributes {stable_mosaic.version = 11 : i64} {
  func.func @_embed_ln_lanedense_kernel(%arg0: i32, %arg1: memref<8x256xf32, #tpu.memory_space<vmem>>, %arg2: memref<1x256xf32, #tpu.memory_space<vmem>>, %arg3: memref<1x256xf32, #tpu.memory_space<vmem>>, %arg4: memref<1x256xf32, #tpu.memory_space<vmem>>, %arg5: memref<256x256xf32, #tpu.memory_space<vmem>>, %arg6: memref<8x256xf32, #tpu.memory_space<vmem>>) attributes {dimension_semantics = [#tpu.dimension_semantics<parallel>], iteration_bounds = array<i64: 1>, scalar_prefetch = 0 : i64, scratch_operands = 0 : i64, tpu.core_type = #tpu.core_type<tc>, window_params = [{transform_indices = @transform_0, window_bounds = array<i64: 8, 256>}, {pipeline_mode = #tpu.pipeline_mode<synchronous>, transform_indices = @transform_1, window_bounds = array<i64: 1, 256>}, {pipeline_mode = #tpu.pipeline_mode<synchronous>, transform_indices = @transform_2, window_bounds = array<i64: 1, 256>}, {pipeline_mode = #tpu.pipeline_mode<synchronous>, transform_indices = @transform_3, window_bounds = array<i64: 1, 256>}, {pipeline_mode = #tpu.pipeline_mode<synchronous>, transform_indices = @transform_4, window_bounds = array<i64: 256, 256>}, {transform_indices = @transform_5, window_bounds = array<i64: 8, 256>}]} {
    %c0 = arith.constant 0 : index
    %c0_0 = arith.constant 0 : index
    %0 = vector.load %arg1[%c0, %c0_0] : memref<8x256xf32, #tpu.memory_space<vmem>>, vector<8x256xf32>
    %c0_1 = arith.constant 0 : index
    %c0_2 = arith.constant 0 : index
    %1 = vector.load %arg2[%c0_1, %c0_2] : memref<1x256xf32, #tpu.memory_space<vmem>>, vector<1x256xf32>
    %2 = vector.broadcast %1 : vector<1x256xf32> to vector<8x256xf32>
    %3 = arith.addf %0, %2 : vector<8x256xf32>
    %c0_3 = arith.constant 0 : index
    %c0_4 = arith.constant 0 : index
    %4 = vector.load %arg5[%c0_3, %c0_4] : memref<256x256xf32, #tpu.memory_space<vmem>>, vector<256x256xf32>
    %cst = arith.constant dense<0.000000e+00> : vector<8x256xf32>
    %5 = tpu.matmul %3, %4, %cst {dimension_numbers = #tpu.dot_dimension_numbers<[1], [0], [0], [1], [0, 0, 1, 1], [], []>} : vector<8x256xf32>, vector<256x256xf32>, vector<8x256xf32> -> vector<8x256xf32>
    %cst_5 = arith.constant 3.125000e-02 : f32
    %6 = vector.broadcast %cst_5 : f32 to vector<8x256xf32>
    %7 = arith.mulf %5, %6 : vector<8x256xf32>
    %8 = arith.subf %3, %7 : vector<8x256xf32>
    %9 = arith.mulf %8, %8 : vector<8x256xf32>
    %cst_6 = arith.constant dense<0.000000e+00> : vector<8x256xf32>
    %10 = tpu.matmul %9, %4, %cst_6 {dimension_numbers = #tpu.dot_dimension_numbers<[1], [0], [0], [1], [0, 0, 1, 1], [], []>} : vector<8x256xf32>, vector<256x256xf32>, vector<8x256xf32> -> vector<8x256xf32>
    %cst_7 = arith.constant 3.125000e-02 : f32
    %11 = vector.broadcast %cst_7 : f32 to vector<8x256xf32>
    %12 = arith.mulf %10, %11 : vector<8x256xf32>
    %cst_8 = arith.constant 9.99999974E-6 : f32
    %13 = vector.broadcast %cst_8 : f32 to vector<8x256xf32>
    %14 = arith.addf %12, %13 : vector<8x256xf32>
    %15 = math.rsqrt %14 : vector<8x256xf32>
    %16 = arith.mulf %8, %15 : vector<8x256xf32>
    %c0_9 = arith.constant 0 : index
    %c0_10 = arith.constant 0 : index
    %17 = vector.load %arg3[%c0_9, %c0_10] : memref<1x256xf32, #tpu.memory_space<vmem>>, vector<1x256xf32>
    %18 = vector.broadcast %17 : vector<1x256xf32> to vector<8x256xf32>
    %19 = arith.mulf %16, %18 : vector<8x256xf32>
    %c0_11 = arith.constant 0 : index
    %c0_12 = arith.constant 0 : index
    %20 = vector.load %arg4[%c0_11, %c0_12] : memref<1x256xf32, #tpu.memory_space<vmem>>, vector<1x256xf32>
    %21 = vector.broadcast %20 : vector<1x256xf32> to vector<8x256xf32>
    %22 = arith.addf %19, %21 : vector<8x256xf32>
    %c0_13 = arith.constant 0 : index
    %c0_14 = arith.constant 0 : index
    %23 = vector.load %arg6[%c0_13, %c0_14] : memref<8x256xf32, #tpu.memory_space<vmem>>, vector<8x256xf32>
    tpu.vector_store %arg6[%c0_13, %c0_14], %22 {strides = array<i32>} : memref<8x256xf32, #tpu.memory_space<vmem>>, vector<8x256xf32>,
    return
  }
  func.func @transform_0(%arg0: i32) -> (i32, i32) {
    %c0_i32 = arith.constant 0 : i32
    %c0_i32_0 = arith.constant 0 : i32
    return %arg0, %c0_i32 : i32, i32
  }
  func.func @transform_1(%arg0: i32) -> (i32, i32) {
    %c0_i32 = arith.constant 0 : i32
    %c0_i32_0 = arith.constant 0 : i32
    %c0_i32_1 = arith.constant 0 : i32
    return %c0_i32, %c0_i32_0 : i32, i32
  }
  func.func @transform_2(%arg0: i32) -> (i32, i32) {
    %c0_i32 = arith.constant 0 : i32
    %c0_i32_0 = arith.constant 0 : i32
    %c0_i32_1 = arith.constant 0 : i32
    return %c0_i32, %c0_i32_0 : i32, i32
  }
  func.func @transform_3(%arg0: i32) -> (i32, i32) {
    %c0_i32 = arith.constant 0 : i32
    %c0_i32_0 = arith.constant 0 : i32
    %c0_i32_1 = arith.constant 0 : i32
    return %c0_i32, %c0_i32_0 : i32, i32
  }
  func.func @transform_4(%arg0: i32) -> (i32, i32) {
    %c0_i32 = arith.constant 0 : i32
    %c0_i32_0 = arith.constant 0 : i32
    %c0_i32_1 = arith.constant 0 : i32
    return %c0_i32, %c0_i32_0 : i32, i32
  }
  func.func @transform_5(%arg0: i32) -> (i32, i32) {
    %c0_i32 = arith.constant 0 : i32
    %c0_i32_0 = arith.constant 0 : i32
    return %arg0, %c0_i32 : i32, i32
  }
}

</mosaic_0001>

<bundles_post_ra>
// kernel: tile.14
= control target key start
LH: loop header
LB: loop body
LE: loop exit
PB: predicated region body
PF: predicated region fallthrough
CT: control target
= control target key end

     0   :  { %s7_s6 = smov 3  ;;  %s14_s9 = smov 3  ;;  %vm4_vm0 = vcmask 261120   ;;  %vm11_vm1 = vcmask 1048320   ;;  %vm18_vm2 = vcmask 785920   ;;  %vm25_vm3 = vcmask 523520   ;;  %s79_s0 = inlined_call_operand.vmem [shape: f32[8,32], index: 0, kind: input, shape index: {}]   ;;  %s80_s1 = inlined_call_operand.vmem [shape: f32[1,256], index: 1, kind: output, shape index: {}]  }
   0x1   :  { %v41_v0 = vld [vmem:[%s79_s0 + $0x3] ss:$4 sm:%s7_s6]   ;;  %s48_s10 = smov 96   ;;  %s21_s11 = smov 3  ;;  %v42_v1 = vld [vmem:[%s79_s0 + $0x2] ss:$4 sm:%s14_s9]  }
   0x2   :  { %9 = vrot.lane.b32.xlu0 %v41_v0, %s48_s10  ;;  %v43_v2 = vld [vmem:[%s79_s0 + $0x1] ss:$4 sm:%s21_s11]   ;;  %s2_s16 = smov 3  ;;  %s49_s17 = smov 32  }
   0x3   :  { %23 = vrot.lane.b32.xlu1 %v43_v2, %s49_s17  ;;  %v3_v3 = vld [vmem:[%s79_s0] ss:$4 sm:%s2_s16]   ;;  %s50_s0 = smov 64  }
   0x4   :  { %5 = vst.msk [vmem:[#allocation0] ss:$8 sm:$0x3] %vm4_vm0, %v3_v3  }
   0x6   :  { %16 = vrot.lane.b32.xlu0 %v42_v1, %s50_s0 }
  0x74   :  { %v10_v4 = vpop.permute.xlu0 %9  }
  0x75   :  { %12 = vst.msk [vmem:[#allocation0] ss:$8 sm:$0x3] %vm11_vm1, %v10_v4   ;;  %v24_v5 = vpop.permute.xlu1 %23  }
  0x78   :  { %v17_v6 = vpop.permute.xlu0 %16  }
  0x79   :  { %19 = vst.msk [vmem:[#allocation0] ss:$8 sm:$0x3] %vm18_vm2, %v17_v6  }
  0x7a   :  { %26 = vst.msk [vmem:[#allocation0] ss:$8 sm:$0x3] %vm25_vm3, %v24_v5  }
  0x81   :  { %v31_v7 = vld [vmem:[#allocation0] sm:$0x1]  ;;  %v36_v8 = vld [vmem:[#allocation0 + $0x8] sm:$0x1] }
  0x82   :  { %34 = vst [vmem:[%s80_s1] sm:$0x1] %v31_v7  ;;  %44 = vst [vmem:[%s80_s1 + $0x1] sm:$0x1] %v36_v8 }

// kernel: tile.13
= control target key start
LH: loop header
LB: loop body
LE: loop exit
PB: predicated region body
PF: predicated region fallthrough
CT: control target
= control target key end

     0   :  { %s22_s0 = inlined_call_operand.vmem [shape: f32[32], index: 0, kind: input, shape index: {}]   ;;  %s23_s1 = inlined_call_operand.vmem [shape: f32[8,32], index: 1, kind: output, shape index: {}]  }
   0x1   :  { %v4_v0 = vld [vmem:[%s22_s0] ss:$0 sm:$0xff] }
   0x2   :  { %5 = vst [vmem:[%s23_s1] sm:$0xff] %v4_v0 }

// kernel: embedding_forward.1
= control target key start
LH: loop header
LB: loop body
LE: loop exit
PB: predicated region body
PF: predicated region fallthrough
CT: control target
= control target key end

     0   :  { %v24_v14 = vlaneseq  ;;  %s559_s4 = inlined_call_operand.vmem [shape: f32[256,256], index: 4, kind: input, shape index: {}]   ;;  %s560_s0 = inlined_call_operand.vmem [shape: f32[8,256], index: 0, kind: input, shape index: {}]   ;;  %s561_s1 = inlined_call_operand.vmem [shape: f32[1,256], index: 1, kind: input, shape index: {}]   ;;  %s562_s2 = inlined_call_operand.vmem [shape: f32[1,256], index: 2, kind: input, shape index: {}]   ;;  %s563_s3 = inlined_call_operand.vmem [shape: f32[1,256], index: 3, kind: input, shape index: {}]   ;;  %s564_s5 = inlined_call_operand.vmem [shape: f32[8,256], index: 5, kind: output, shape index: {}]  }
   0x1   :  { %v67_v0 = vld [vmem:[%s559_s4 + $0xf8] sm:$0xff]  ;;  %v66_v1 = vld [vmem:[%s559_s4 + $0xf0] sm:$0xff]  ;;  %v65_v2 = vld [vmem:[%s559_s4 + $0xe8] sm:$0xff] }
   0x2   :  { %100 = vmatprep.subr.mxu0 %v67_v0  ;;  %v64_v3 = vld [vmem:[%s559_s4 + $0xe0] sm:$0xff]  ;;  %177 = vmatprep.subr.mxu1 %v67_v0  ;;  %v63_v4 = vld [vmem:[%s559_s4 + $0xd8] sm:$0xff]  ;;  %v62_v5 = vld [vmem:[%s559_s4 + $0xd0] sm:$0xff]  ;;  %v378_v19 = vshrl.u32 %v24_v14, 7 }
   0x3   :  { %101 = vmatpush1.msra.mxu0 %v66_v1  ;;  %178 = vmatpush1.msra.mxu1 %v66_v1  ;;  %v61_v6 = vld [vmem:[%s559_s4 + $0xc8] sm:$0xff]  ;;  %v60_v7 = vld [vmem:[%s559_s4 + $0xc0] sm:$0xff]  ;;  %v59_v8 = vld [vmem:[%s559_s4 + $0xb8] sm:$0xff] }
   0x4   :  { %102 = vmatprep.subr.mxu0 %v65_v2  ;;  %179 = vmatprep.subr.mxu1 %v65_v2  ;;  %v58_v9 = vld [vmem:[%s559_s4 + $0xb0] sm:$0xff]  ;;  %v57_v10 = vld [vmem:[%s559_s4 + $0xa8] sm:$0xff]  ;;  %v56_v11 = vld [vmem:[%s559_s4 + $0xa0] sm:$0xff]  ;;  %v393_v24 = vsub.s32 1, %v378_v19  ;;  %v511_v63 = vsub.s32 0, %v378_v19 }
   0x5   :  { %103 = vmatpush1.msra.mxu0 %v64_v3  ;;  %180 = vmatpush1.msra.mxu1 %v64_v3  ;;  %v55_v12 = vld [vmem:[%s559_s4 + $0x98] sm:$0xff]  ;;  %v54_v13 = vld [vmem:[%s559_s4 + $0x90] sm:$0xff]  ;;  %v53_v15 = vld [vmem:[%s559_s4 + $0x88] sm:$0xff] }
   0x6   :  { %104 = vmatprep.subr.mxu0 %v63_v4  ;;  %181 = vmatprep.subr.mxu1 %v63_v4  ;;  %v52_v16 = vld [vmem:[%s559_s4 + $0x80] sm:$0xff]  ;;  %v51_v17 = vld [vmem:[%s559_s4 + $0x78] sm:$0xff]  ;;  %v50_v18 = vld [vmem:[%s559_s4 + $0x70] sm:$0xff] }
   0x7   :  { %105 = vmatpush1.msra.mxu0 %v62_v5  ;;  %182 = vmatpush1.msra.mxu1 %v62_v5  ;;  %v49_v20 = vld [vmem:[%s559_s4 + $0x68] sm:$0xff]  ;;  %v48_v21 = vld [vmem:[%s559_s4 + $0x60] sm:$0xff]  ;;  %v47_v22 = vld [vmem:[%s559_s4 + $0x58] sm:$0xff] }
   0x8   :  { %106 = vmatprep.subr.mxu0 %v61_v6  ;;  %183 = vmatprep.subr.mxu1 %v61_v6  ;;  %v46_v23 = vld [vmem:[%s559_s4 + $0x50] sm:$0xff]  ;;  %v45_v25 = vld [vmem:[%s559_s4 + $0x48] sm:$0xff]  ;;  %v44_v26 = vld [vmem:[%s559_s4 + $0x40] sm:$0xff] }
   0x9   :  { %107 = vmatpush1.msra.mxu0 %v60_v7  ;;  %184 = vmatpush1.msra.mxu1 %v60_v7  ;;  %v43_v27 = vld [vmem:[%s559_s4 + $0x38] sm:$0xff]  ;;  %v21_v28 = vld [vmem:[%s560_s0 + $0x8] sm:$0xff]  ;;  %v410_v29 = vld [vmem:[%s561_s1] sm:$0x3] }
   0xa   :  { %108 = vmatprep.subr.mxu0 %v59_v8  ;;  %185 = vmatprep.subr.mxu1 %v59_v8  ;;  %v42_v30 = vld [vmem:[%s559_s4 + $0x30] sm:$0xff]  ;;  %v31_v31 = vrot.slane %v410_v29, %v393_v24  ;;  %v41_v32 = vld [vmem:[%s559_s4 + $0x28] sm:$0xff]  ;;  %v40_v33 = vld [vmem:[%s559_s4 + $0x20] sm:$0xff]  ;;  %v27_v4 = vrot.slane %v410_v29, %v511_v63 }
   0xb   :  { %109 = vmatpush1.msra.mxu0 %v58_v9  ;;  %186 = vmatpush1.msra.mxu1 %v58_v9  ;;  %v39_v35 = vld [vmem:[%s559_s4 + $0x18] sm:$0xff]  ;;  %v38_v36 = vld [vmem:[%s559_s4 + $0x10] sm:$0xff]  ;;  %v37_v37 = vld [vmem:[%s559_s4 + $0x8] sm:$0xff] }
   0xc   :  { %110 = vmatprep.subr.mxu0 %v57_v10  ;;  %187 = vmatprep.subr.mxu1 %v57_v10  ;;  %v423_v34 = vadd.f32 %v31_v31, %v21_v28  ;;  %v36_v38 = vld [vmem:[%s559_s4] sm:$0xff]  ;;  %v99_v39 = vld [vmem:[%s559_s4 + $0x1f8] sm:$0xff]  ;;  %v98_v40 = vld [vmem:[%s559_s4 + $0x1f0] sm:$0xff] }
   0xd   :  { %111 = vmatpush1.msra.mxu0 %v56_v11  ;;  %188 = vmatpush1.msra.mxu1 %v56_v11  ;;  %v97_v41 = vld [vmem:[%s559_s4 + $0x1e8] sm:$0xff]  ;;  %v96_v42 = vld [vmem:[%s559_s4 + $0x1e0] sm:$0xff]  ;;  %v95_v43 = vld [vmem:[%s559_s4 + $0x1d8] sm:$0xff] }
   0xe   :  { %112 = vmatprep.subr.mxu0 %v55_v12  ;;  %189 = vmatprep.subr.mxu1 %v55_v12  ;;  %v94_v44 = vld [vmem:[%s559_s4 + $0x1d0] sm:$0xff]  ;;  %v93_v45 = vld [vmem:[%s559_s4 + $0x1c8] sm:$0xff]  ;;  %v92_v46 = vld [vmem:[%s559_s4 + $0x1c0] sm:$0xff] }
   0xf   :  { %113 = vmatpush1.msra.mxu0 %v54_v13  ;;  %190 = vmatpush1.msra.mxu1 %v54_v13  ;;  %v91_v47 = vld [vmem:[%s559_s4 + $0x1b8] sm:$0xff]  ;;  %v90_v48 = vld [vmem:[%s559_s4 + $0x1b0] sm:$0xff]  ;;  %v89_v49 = vld [vmem:[%s559_s4 + $0x1a8] sm:$0xff] }
  0x10   :  { %114 = vmatprep.subr.mxu0 %v53_v15  ;;  %191 = vmatprep.subr.mxu1 %v53_v15  ;;  %v88_v50 = vld [vmem:[%s559_s4 + $0x1a0] sm:$0xff]  ;;  %v87_v51 = vld [vmem:[%s559_s4 + $0x198] sm:$0xff]  ;;  %v86_v52 = vld [vmem:[%s559_s4 + $0x190] sm:$0xff] }
  0x11   :  { %115 = vmatpush1.msra.mxu0 %v52_v16  ;;  %192 = vmatpush1.msra.mxu1 %v52_v16  ;;  %v85_v53 = vld [vmem:[%s559_s4 + $0x188] sm:$0xff]  ;;  %v84_v54 = vld [vmem:[%s559_s4 + $0x180] sm:$0xff]  ;;  %v83_v55 = vld [vmem:[%s559_s4 + $0x178] sm:$0xff] }
  0x12   :  { %116 = vmatprep.subr.mxu0 %v51_v17  ;;  %193 = vmatprep.subr.mxu1 %v51_v17  ;;  %v82_v56 = vld [vmem:[%s559_s4 + $0x170] sm:$0xff]  ;;  %v81_v57 = vld [vmem:[%s559_s4 + $0x168] sm:$0xff]  ;;  %v80_v58 = vld [vmem:[%s559_s4 + $0x160] sm:$0xff] }
  0x13   :  { %117 = vmatpush1.msra.mxu0 %v50_v18  ;;  %194 = vmatpush1.msra.mxu1 %v50_v18  ;;  %v79_v59 = vld [vmem:[%s559_s4 + $0x158] sm:$0xff]  ;;  %v78_v60 = vld [vmem:[%s559_s4 + $0x150] sm:$0xff]  ;;  %v77_v61 = vld [vmem:[%s559_s4 + $0x148] sm:$0xff] }
  0x14   :  { %118 = vmatprep.subr.mxu0 %v49_v20  ;;  %195 = vmatprep.subr.mxu1 %v49_v20  ;;  %v76_v62 = vld [vmem:[%s559_s4 + $0x140] sm:$0xff]  ;;  %v75_v0 = vld [vmem:[%s559_s4 + $0x138] sm:$0xff]  ;;  %v74_v1 = vld [vmem:[%s559_s4 + $0x130] sm:$0xff] }
  0x15   :  { %119 = vmatpush1.msra.mxu0 %v48_v21  ;;  %196 = vmatpush1.msra.mxu1 %v48_v21  ;;  %v73_v2 = vld [vmem:[%s559_s4 + $0x128] sm:$0xff]  ;;  %v72_v3 = vld [vmem:[%s559_s4 + $0x120] sm:$0xff]  ;;  %v71_v5 = vld [vmem:[%s559_s4 + $0x118] sm:$0xff] }
  0x16   :  { %120 = vmatprep.subr.mxu0 %v47_v22  ;;  %197 = vmatprep.subr.mxu1 %v47_v22  ;;  %v20_v6 = vld [vmem:[%s560_s0] sm:$0xff]  ;;  %v70_v7 = vld [vmem:[%s559_s4 + $0x110] sm:$0xff]  ;;  %v69_v8 = vld [vmem:[%s559_s4 + $0x108] sm:$0xff] }
  0x17   :  { %121 = vmatpush1.msra.mxu0 %v46_v23  ;;  %198 = vmatpush1.msra.mxu1 %v46_v23  ;;  %v68_v9 = vld [vmem:[%s559_s4 + $0x100] sm:$0xff]  ;;  %v34_v10 = vadd.f32 %v27_v4, %v20_v6 }
  0x18   :  { %122 = vmatprep.subr.mxu0 %v45_v25  ;;  %199 = vmatprep.subr.mxu1 %v45_v25 }
  0x19   :  { %123 = vmatpush1.msra.mxu0 %v44_v26  ;;  %200 = vmatpush1.msra.mxu1 %v44_v26  ;;  %v256_v26 = vld [vmem:[%s562_s2] sm:$0x3] }
  0x1a   :  { %124 = vmatprep.subr.mxu0 %v43_v27  ;;  %201 = vmatprep.subr.mxu1 %v43_v27  ;;  %v270_v27 = vld [vmem:[%s563_s3] sm:$0x3]  ;;  %v261_v28 = vrot.slane %v256_v26, %v511_v63 }
  0x1b   :  { %125 = vmatpush1.msra.mxu0 %v42_v30  ;;  %164 = vmatprep.mubr.f32.mxu0 %v423_v34  ;;  %v275_v31 = vrot.slane %v270_v27, %v511_v63 }
  0x1c   :  { %126 = vmatprep.subr.mxu0 %v41_v32  ;;  %202 = vmatpush1.msra.mxu1 %v42_v30  ;;  %v265_v30 = vrot.slane %v256_v26, %v393_v24 }
  0x1d   :  { %127 = vmatpush1.msra.mxu0 %v40_v33  ;;  %203 = vmatprep.subr.mxu1 %v41_v32 }
  0x1e   :  { %128 = vmatprep.subr.mxu0 %v39_v35  ;;  %204 = vmatpush1.msra.mxu1 %v40_v33 }
  0x1f   :  { %129 = vmatpush1.msra.mxu0 %v38_v36  ;;  %205 = vmatprep.subr.mxu1 %v39_v35 }
  0x20   :  { %130 = vmatprep.subr.mxu0 %v37_v37  ;;  %206 = vmatpush1.msra.mxu1 %v38_v36 }
  0x21   :  { %131 = vmatpush1.msra.mxu0 %v36_v38  ;;  %207 = vmatprep.subr.mxu1 %v37_v37 }
  0x22   :  { %132 = vmatprep.subr.mxu0 %v99_v39  ;;  %208 = vmatpush1.msra.mxu1 %v36_v38 }
  0x23   :  { %133 = vmatpush2.msra.mxu0 %v98_v40  ;;  %209 = vmatprep.subr.mxu1 %v99_v39 }
  0x24   :  { %134 = vmatprep.subr.mxu0 %v97_v41  ;;  %210 = vmatpush2.msra.mxu1 %v98_v40 }
  0x25   :  { %135 = vmatpush2.msra.mxu0 %v96_v42  ;;  %211 = vmatprep.subr.mxu1 %v97_v41 }
  0x26   :  { %136 = vmatprep.subr.mxu0 %v95_v43  ;;  %212 = vmatpush2.msra.mxu1 %v96_v42 }
  0x27   :  { %137 = vmatpush2.msra.mxu0 %v94_v44  ;;  %213 = vmatprep.subr.mxu1 %v95_v43 }
  0x28   :  { %138 = vmatprep.subr.mxu0 %v93_v45  ;;  %214 = vmatpush2.msra.mxu1 %v94_v44 }
  0x29   :  { %139 = vmatpush2.msra.mxu0 %v92_v46  ;;  %215 = vmatprep.subr.mxu1 %v93_v45 }
  0x2a   :  { %140 = vmatprep.subr.mxu0 %v91_v47  ;;  %216 = vmatpush2.msra.mxu1 %v92_v46 }
  0x2b   :  { %141 = vmatpush2.msra.mxu0 %v90_v48  ;;  %217 = vmatprep.subr.mxu1 %v91_v47 }
  0x2c   :  { %142 = vmatprep.subr.mxu0 %v89_v49  ;;  %218 = vmatpush2.msra.mxu1 %v90_v48 }
  0x2d   :  { %143 = vmatpush2.msra.mxu0 %v88_v50  ;;  %219 = vmatprep.subr.mxu1 %v89_v49 }
  0x2e   :  { %144 = vmatprep.subr.mxu0 %v87_v51  ;;  %220 = vmatpush2.msra.mxu1 %v88_v50 }
  0x2f   :  { %145 = vmatpush2.msra.mxu0 %v86_v52  ;;  %221 = vmatprep.subr.mxu1 %v87_v51 }
  0x30   :  { %146 = vmatprep.subr.mxu0 %v85_v53  ;;  %222 = vmatpush2.msra.mxu1 %v86_v52 }
  0x31   :  { %147 = vmatpush2.msra.mxu0 %v84_v54  ;;  %223 = vmatprep.subr.mxu1 %v85_v53 }
  0x32   :  { %148 = vmatprep.subr.mxu0 %v83_v55  ;;  %224 = vmatpush2.msra.mxu1 %v84_v54 }
  0x33   :  { %149 = vmatpush2.msra.mxu0 %v82_v56  ;;  %225 = vmatprep.subr.mxu1 %v83_v55 }
  0x34   :  { %150 = vmatprep.subr.mxu0 %v81_v57  ;;  %226 = vmatpush2.msra.mxu1 %v82_v56 }
  0x35   :  { %151 = vmatpush2.msra.mxu0 %v80_v58  ;;  %227 = vmatprep.subr.mxu1 %v81_v57 }
  0x36   :  { %152 = vmatprep.subr.mxu0 %v79_v59  ;;  %228 = vmatpush2.msra.mxu1 %v80_v58 }
  0x37   :  { %153 = vmatpush2.msra.mxu0 %v78_v60  ;;  %229 = vmatprep.subr.mxu1 %v79_v59 }
  0x38   :  { %154 = vmatprep.subr.mxu0 %v77_v61  ;;  %230 = vmatpush2.msra.mxu1 %v78_v60 }
  0x39   :  { %155 = vmatpush2.msra.mxu0 %v76_v62  ;;  %231 = vmatprep.subr.mxu1 %v77_v61 }
  0x3a   :  { %156 = vmatprep.subr.mxu0 %v75_v0  ;;  %232 = vmatpush2.msra.mxu1 %v76_v62 }
  0x3b   :  { %157 = vmatpush2.msra.mxu0 %v74_v1  ;;  %233 = vmatprep.subr.mxu1 %v75_v0 }
  0x3c   :  { %158 = vmatprep.subr.mxu0 %v73_v2  ;;  %234 = vmatpush2.msra.mxu1 %v74_v1 }
  0x3d   :  { %159 = vmatpush2.msra.mxu0 %v72_v3  ;;  %235 = vmatprep.subr.mxu1 %v73_v2 }
  0x3e   :  { %160 = vmatprep.subr.mxu0 %v71_v5  ;;  %236 = vmatpush2.msra.mxu1 %v72_v3 }
  0x3f   :  { %161 = vmatpush2.msra.mxu0 %v70_v7  ;;  %237 = vmatprep.subr.mxu1 %v71_v5 }
  0x40   :  { %162 = vmatprep.subr.mxu0 %v69_v8  ;;  %238 = vmatpush2.msra.mxu1 %v70_v7 }
  0x41   :  { %163 = vmatpush2.msra.mxu0 %v68_v9  ;;  %239 = vmatprep.subr.mxu1 %v69_v8 }
  0x42   :  { %165 = vmatmul.mubr.f32.vlgmr.msra.gmra.mxu0 %v34_v10  ;;  %240 = vmatpush2.msra.mxu1 %v68_v9 }
 0x102   :  { %v166_v11 = vpop.f32.mrf.mxu0 }
 0x103   :  { %v171_v12 = vmul.f32 0.03125, %v166_v11 }
 0x104   :  { %v168_v13 = vpop.f32.mrf.mxu0 }
 0x105   :  { %v172_v14 = vmul.f32 0.03125, %v168_v13  ;;  %v173_v15 = vsub.f32 %v34_v10, %v171_v12 }
 0x107   :  { %v174_v16 = vsub.f32 %v423_v34, %v172_v14  ;;  %v175_v18 = vmul.f32 %v173_v15, %v173_v15  ;;  %v279_v34 = vrot.slane %v270_v27, %v393_v24 }
 0x109   :  { %v176_v17 = vmul.f32 %v174_v16, %v174_v16 }
 0x10b   :  { %241 = vmatprep.mubr.f32.mxu1 %v176_v17 }
 0x10c   :  { %242 = vmatmul.mubr.f32.vlgmr.msra.gmra.mxu1 %v175_v18 }
 0x1cc   :  { %v243_v19 = vpop.f32.mrf.mxu1 }
 0x1cd   :  { %v248_v20 = vmul.f32 0.03125, %v243_v19 }
 0x1ce   :  { %v245_v21 = vpop.f32.mrf.mxu1 }
 0x1cf   :  { %v250_v22 = vadd.f32 1e-05, %v248_v20  ;;  %v249_v23 = vmul.f32 0.03125, %v245_v21 }
 0x1d1   :  { %290 = vrsqrt.f32 %v250_v22  ;;  %v251_v25 = vadd.f32 1e-05, %v249_v23 }
 0x1d3   :  { %292 = vrsqrt.f32 %v251_v25 }
 0x1de   :  { %v291_v29 = vpop.eup %290 }
 0x1df   :  { %v254_v32 = vmul.f32 %v291_v29, %v173_v15 }
 0x1e0   :  { %v293_v33 = vpop.eup %292 }
 0x1e1   :  { %v268_v35 = vmul.f32 %v261_v28, %v254_v32  ;;  %v255_v36 = vmul.f32 %v293_v33, %v174_v16 }
 0x1e3   :  { %v282_v37 = vadd.f32 %v275_v31, %v268_v35  ;;  %v269_v38 = vmul.f32 %v265_v30, %v255_v36 }
 0x1e5   :  { %284 = vst [vmem:[%s564_s5] sm:$0xff] %v282_v37  ;;  %v283_v39 = vadd.f32 %v279_v34, %v269_v38 }
 0x1e7   :  { %285 = vst [vmem:[%s564_s5 + $0x8] sm:$0xff] %v283_v39 }

</bundles_post_ra>
